<compile_context>
chip_gen: v6e
topology: v6e:2x2x1
jax: 0.10.0
libtpu: 0.0.40
codegen_flags: <defaults>
</compile_context>

<pallas_src>
import jax
import jax.numpy as jnp
from jax.experimental import pallas as pl
from jax.experimental.pallas import tpu as pltpu

BN_EPS = 1e-5
_MIB = 1024 * 1024


def _round_up(n, m):
    return ((n + m - 1) // m) * m


def resnet_block_kernel(x_ref, w1_ref, b1_ref, w2_ref, b2_ref, o_ref):
    """out = Lin2(ReLU(BN2(Lin1(ReLU(BN1(x)))))) + x   (eval-mode BN / identity Dropout).

    BN eval scale is pre-folded into the bf16 weights (positive scale commutes through
    ReLU). Matmuls run on the MXU in bf16 with f32 accumulation; the elementwise path
    (ReLU / bias / residual) stays f32.
    """
    x32 = x_ref[...].astype(jnp.float32)                      # (tile_n, F)

    # Block 1: BN (folded into w1) -> Dropout(identity) -> ReLU -> Linear
    h = jnp.maximum(x32, 0.0).astype(jnp.bfloat16)
    h = jnp.dot(h, w1_ref[...], preferred_element_type=jnp.float32) + b1_ref[...]

    # Block 2: BN (folded into w2) -> Dropout(identity) -> ReLU -> Linear
    h = jnp.maximum(h, 0.0).astype(jnp.bfloat16)
    h = jnp.dot(h, w2_ref[...], preferred_element_type=jnp.float32) + b2_ref[...]

    # Residual
    o_ref[...] = (h + x32).astype(o_ref.dtype)


def _choose_tile_n(n_rows, feat, act_bytes, requested=None):
    """Batch-tile height: F-aware (~2 MiB activation tile, clamped to [256, 2048] rows),
    multiple of 8, never taller than the batch, and kept <= half the batch when possible
    so the grid has >= 2 steps for v7x's two TensorCores."""
    rows8 = _round_up(max(int(n_rows), 1), 8)
    if requested is not None:
        tile = max(8, (int(requested) // 8) * 8)
    else:
        target = (2 * _MIB) // max(1, feat * act_bytes)
        tile = min(2048, max(256, (target // 8) * 8))
    if rows8 >= 16:
        tile = min(tile, _round_up((rows8 + 1) // 2, 8))
    return min(tile, rows8)


def resnet_module_forward(x, w1, b1, w2, b2, *, tile_n=None):
    """x: (N, F) bf16 or f32. w1/w2: (F, F) bf16, BN-folded, stored (in, out). b1/b2: (1, F) f32."""
    N, F = x.shape
    act_bytes = jnp.dtype(x.dtype).itemsize
    w_bytes = jnp.dtype(w1.dtype).itemsize

    tile = _choose_tile_n(N, F, act_bytes, tile_n)
    # Ragged last block is masked by Pallas -> no jnp.pad (no extra HBM copy of x).
    grid = (pl.cdiv(N, tile),)

    cost = pl.CostEstimate(
        flops=4 * N * F * F,                                  # two (N,F)x(F,F) matmuls
        transcendentals=0,
        bytes_accessed=(2 * N * F * act_bytes                 # x in + out
                        + 2 * F * F * w_bytes                 # resident weights
                        + 2 * F * 4),                         # biases
    )

    def build(single_buffer_weights):
        if single_buffer_weights:
            def resident(shape):
                return pl.BlockSpec(shape, lambda i: (0, 0),
                                    pipeline_mode=pl.Buffered(1))
        else:
            def resident(shape):
                return pl.BlockSpec(shape, lambda i: (0, 0))

        weight_bufs = 1 if single_buffer_weights else 2
        footprint = (2 * F * F * w_bytes * weight_bufs        # resident weights
                     + 2 * F * 4 * weight_bufs                # resident biases
                     + 2 * 2 * tile * F * act_bytes)          # double-buffered x/out tiles
        try:
            vmem_cap = pltpu.get_tpu_info().vmem_capacity_bytes
        except Exception:
            vmem_cap = 64 * _MIB                              # v7x per-TC capacity (worst case)
        vmem_limit = footprint + 16 * _MIB                    # footprint + headroom
        vmem_limit = max(vmem_limit, 32 * _MIB)               # not below default scoped limit
        vmem_limit = min(vmem_limit, max(vmem_cap - 8 * _MIB, 16 * _MIB))

        return pl.pallas_call(
            resnet_block_kernel,
            out_shape=jax.ShapeDtypeStruct((N, F), x.dtype),
            grid=grid,
            in_specs=[
                pl.BlockSpec((tile, F), lambda i: (i, 0)),    # x: batch-tiled, pipelined
                resident((F, F)),                             # w1: VMEM-resident
                resident((1, F)),                             # b1
                resident((F, F)),                             # w2
                resident((1, F)),                             # b2
            ],
            out_specs=pl.BlockSpec((tile, F), lambda i: (i, 0)),
            compiler_params=pltpu.CompilerParams(
                dimension_semantics=("parallel",),            # v7x: shard batch tiles over 2 TCs
                vmem_limit_bytes=int(vmem_limit),
            ),
            cost_estimate=cost,
        )

    try:
        return build(single_buffer_weights=True)(x, w1, b1, w2, b2)
    except Exception:
        # pl.Buffered(1) not accepted by this jax/libtpu -> default double-buffered weights.
        return build(single_buffer_weights=False)(x, w1, b1, w2, b2)


def init_params(key, num_features):
    """PyTorch-matching init: Linear W ~ N(0, 0.001) (out,in) stored as W.T (in,out), b = 0."""
    k1, k2 = jax.random.split(key)
    w1 = (jax.random.normal(k1, (num_features, num_features), jnp.float32) * 0.001).T
    w2 = (jax.random.normal(k2, (num_features, num_features), jnp.float32) * 0.001).T
    b1 = jnp.zeros((1, num_features), jnp.float32)
    b2 = jnp.zeros((1, num_features), jnp.float32)
    return w1, b1, w2, b2


def prepare_params(w1, b1, w2, b2):
    """One-time prep: fold eval-mode BN scale 1/sqrt(var+eps) into weights, cast to bf16."""
    inv = 1.0 / jnp.sqrt(jnp.float32(1.0 + BN_EPS))
    return ((w1 * inv).astype(jnp.bfloat16), b1,
            (w2 * inv).astype(jnp.bfloat16), b2)


def reference_forward_mirror(x, w1, b1, w2, b2):
    """Pure-JAX reference mirroring the kernel math (bf16 matmul operands, f32 accum)."""
    x32 = x.astype(jnp.float32)
    h = jnp.maximum(x32, 0.0).astype(jnp.bfloat16)
    h = jnp.dot(h, w1, preferred_element_type=jnp.float32) + b1
    h = jnp.maximum(h, 0.0).astype(jnp.bfloat16)
    h = jnp.dot(h, w2, preferred_element_type=jnp.float32) + b2
    return h + x32


def reference_forward_f32(x, w1_f32, b1, w2_f32, b2):
    """Full-f32 PyTorch(eval)-semantics reference, computed from the same input values."""
    x32 = x.astype(jnp.float32)
    inv = 1.0 / jnp.sqrt(1.0 + BN_EPS)
    h = jnp.maximum(x32 * inv, 0.0) @ w1_f32 + b1
    h = jnp.maximum(h * inv, 0.0) @ w2_f32 + b2
    return h + x32


if __name__ == "__main__":
    num_features = 128   # lane-aligned feature dim
    batch = 20           # not a tile multiple -> exercises the ragged (masked) last block

    key = jax.random.PRNGKey(0)
    kx, kp = jax.random.split(key)
    # Activations streamed in bf16 (kernel is HBM-bound at this F); cast once here.
    x = jax.random.normal(kx, (batch, num_features), jnp.float32).astype(jnp.bfloat16)

    w1_f32, b1, w2_f32, b2 = init_params(kp, num_features)
    w1, b1, w2, b2 = prepare_params(w1_f32, b1, w2_f32, b2)

    out = resnet_module_forward(x, w1, b1, w2, b2)
    out = jax.block_until_ready(out)

    ref_mirror = reference_forward_mirror(x, w1, b1, w2, b2)
    ref_f32 = reference_forward_f32(x, w1_f32, b1, w2_f32, b2)

    assert out.shape == (batch, num_features)
    assert out.dtype == x.dtype
    o32 = out.astype(jnp.float32)
    assert jnp.allclose(o32, ref_mirror, atol=2e-2, rtol=1e-2), "mismatch vs mirrored bf16 reference"
    assert jnp.allclose(o32, ref_f32, atol=3e-2, rtol=1e-2), "mismatch vs f32 PyTorch-semantics reference"

    print("KERNEL_OK")
</pallas_src>

<mosaic_0001>
module attributes {stable_mosaic.version = 11 : i64} {
  func.func @resnet_block_kernel(%arg0: i32, %arg1: memref<16x128xbf16, #tpu.memory_space<vmem>>, %arg2: memref<128x128xbf16, #tpu.memory_space<vmem>>, %arg3: memref<1x128xf32, #tpu.memory_space<vmem>>, %arg4: memref<128x128xbf16, #tpu.memory_space<vmem>>, %arg5: memref<1x128xf32, #tpu.memory_space<vmem>>, %arg6: memref<16x128xbf16, #tpu.memory_space<vmem>>) attributes {dimension_semantics = [#tpu.dimension_semantics<parallel>], iteration_bounds = array<i64: 2>, scalar_prefetch = 0 : i64, scratch_operands = 0 : i64, tpu.core_type = #tpu.core_type<tc>, window_params = [{transform_indices = @transform_0, window_bounds = array<i64: 16, 128>}, {pipeline_mode = #tpu.pipeline_mode<synchronous>, transform_indices = @transform_1, window_bounds = array<i64: 128, 128>}, {pipeline_mode = #tpu.pipeline_mode<synchronous>, transform_indices = @transform_2, window_bounds = array<i64: 1, 128>}, {pipeline_mode = #tpu.pipeline_mode<synchronous>, transform_indices = @transform_3, window_bounds = array<i64: 128, 128>}, {pipeline_mode = #tpu.pipeline_mode<synchronous>, transform_indices = @transform_4, window_bounds = array<i64: 1, 128>}, {transform_indices = @transform_5, window_bounds = array<i64: 16, 128>}]} {
    %c0 = arith.constant 0 : index
    %c0_0 = arith.constant 0 : index
    %0 = vector.load %arg1[%c0, %c0_0] : memref<16x128xbf16, #tpu.memory_space<vmem>>, vector<16x128xbf16>
    %1 = arith.extf %0 : vector<16x128xbf16> to vector<16x128xf32>
    %cst = arith.constant 0.000000e+00 : f32
    %2 = vector.broadcast %cst : f32 to vector<16x128xf32>
    %3 = arith.maximumf %1, %2 : vector<16x128xf32>
    %4 = arith.truncf %3 : vector<16x128xf32> to vector<16x128xbf16>
    %c0_1 = arith.constant 0 : index
    %c0_2 = arith.constant 0 : index
    %5 = vector.load %arg2[%c0_1, %c0_2] : memref<128x128xbf16, #tpu.memory_space<vmem>>, vector<128x128xbf16>
    %cst_3 = arith.constant dense<0.000000e+00> : vector<16x128xf32>
    %6 = tpu.matmul %4, %5, %cst_3 {dimension_numbers = #tpu.dot_dimension_numbers<[1], [0], [0], [1], [0, 0, 1, 1], [], []>} : vector<16x128xbf16>, vector<128x128xbf16>, vector<16x128xf32> -> vector<16x128xf32>
    %c0_4 = arith.constant 0 : index
    %c0_5 = arith.constant 0 : index
    %7 = vector.load %arg3[%c0_4, %c0_5] : memref<1x128xf32, #tpu.memory_space<vmem>>, vector<1x128xf32>
    %8 = vector.broadcast %7 : vector<1x128xf32> to vector<16x128xf32>
    %9 = arith.addf %6, %8 : vector<16x128xf32>
    %cst_6 = arith.constant 0.000000e+00 : f32
    %10 = vector.broadcast %cst_6 : f32 to vector<16x128xf32>
    %11 = arith.maximumf %9, %10 : vector<16x128xf32>
    %12 = arith.truncf %11 : vector<16x128xf32> to vector<16x128xbf16>
    %c0_7 = arith.constant 0 : index
    %c0_8 = arith.constant 0 : index
    %13 = vector.load %arg4[%c0_7, %c0_8] : memref<128x128xbf16, #tpu.memory_space<vmem>>, vector<128x128xbf16>
    %cst_9 = arith.constant dense<0.000000e+00> : vector<16x128xf32>
    %14 = tpu.matmul %12, %13, %cst_9 {dimension_numbers = #tpu.dot_dimension_numbers<[1], [0], [0], [1], [0, 0, 1, 1], [], []>} : vector<16x128xbf16>, vector<128x128xbf16>, vector<16x128xf32> -> vector<16x128xf32>
    %c0_10 = arith.constant 0 : index
    %c0_11 = arith.constant 0 : index
    %15 = vector.load %arg5[%c0_10, %c0_11] : memref<1x128xf32, #tpu.memory_space<vmem>>, vector<1x128xf32>
    %16 = vector.broadcast %15 : vector<1x128xf32> to vector<16x128xf32>
    %17 = arith.addf %14, %16 : vector<16x128xf32>
    %18 = arith.addf %17, %1 : vector<16x128xf32>
    %19 = arith.truncf %18 : vector<16x128xf32> to vector<16x128xbf16>
    %c0_12 = arith.constant 0 : index
    %c0_13 = arith.constant 0 : index
    %20 = vector.load %arg6[%c0_12, %c0_13] : memref<16x128xbf16, #tpu.memory_space<vmem>>, vector<16x128xbf16>
    tpu.vector_store %arg6[%c0_12, %c0_13], %19 {strides = array<i32>} : memref<16x128xbf16, #tpu.memory_space<vmem>>, vector<16x128xbf16>,
    return
  }
  func.func @transform_0(%arg0: i32) -> (i32, i32) {
    %c0_i32 = arith.constant 0 : i32
    %c0_i32_0 = arith.constant 0 : i32
    return %arg0, %c0_i32 : i32, i32
  }
  func.func @transform_1(%arg0: i32) -> (i32, i32) {
    %c0_i32 = arith.constant 0 : i32
    %c0_i32_0 = arith.constant 0 : i32
    %c0_i32_1 = arith.constant 0 : i32
    return %c0_i32, %c0_i32_0 : i32, i32
  }
  func.func @transform_2(%arg0: i32) -> (i32, i32) {
    %c0_i32 = arith.constant 0 : i32
    %c0_i32_0 = arith.constant 0 : i32
    %c0_i32_1 = arith.constant 0 : i32
    return %c0_i32, %c0_i32_0 : i32, i32
  }
  func.func @transform_3(%arg0: i32) -> (i32, i32) {
    %c0_i32 = arith.constant 0 : i32
    %c0_i32_0 = arith.constant 0 : i32
    %c0_i32_1 = arith.constant 0 : i32
    return %c0_i32, %c0_i32_0 : i32, i32
  }
  func.func @transform_4(%arg0: i32) -> (i32, i32) {
    %c0_i32 = arith.constant 0 : i32
    %c0_i32_0 = arith.constant 0 : i32
    %c0_i32_1 = arith.constant 0 : i32
    return %c0_i32, %c0_i32_0 : i32, i32
  }
  func.func @transform_5(%arg0: i32) -> (i32, i32) {
    %c0_i32 = arith.constant 0 : i32
    %c0_i32_0 = arith.constant 0 : i32
    return %arg0, %c0_i32 : i32, i32
  }
}

module attributes {stable_mosaic.version = 11 : i64} {
  func.func @resnet_block_kernel(%arg0: i32, %arg1: memref<16x128xbf16, #tpu.memory_space<vmem>>, %arg2: memref<128x128xbf16, #tpu.memory_space<vmem>>, %arg3: memref<1x128xf32, #tpu.memory_space<vmem>>, %arg4: memref<128x128xbf16, #tpu.memory_space<vmem>>, %arg5: memref<1x128xf32, #tpu.memory_space<vmem>>, %arg6: memref<16x128xbf16, #tpu.memory_space<vmem>>) attributes {dimension_semantics = [#tpu.dimension_semantics<parallel>], iteration_bounds = array<i64: 2>, scalar_prefetch = 0 : i64, scratch_operands = 0 : i64, tpu.core_type = #tpu.core_type<tc>, window_params = [{transform_indices = @transform_0, window_bounds = array<i64: 16, 128>}, {pipeline_mode = #tpu.pipeline_mode<synchronous>, transform_indices = @transform_1, window_bounds = array<i64: 128, 128>}, {pipeline_mode = #tpu.pipeline_mode<synchronous>, transform_indices = @transform_2, window_bounds = array<i64: 1, 128>}, {pipeline_mode = #tpu.pipeline_mode<synchronous>, transform_indices = @transform_3, window_bounds = array<i64: 128, 128>}, {pipeline_mode = #tpu.pipeline_mode<synchronous>, transform_indices = @transform_4, window_bounds = array<i64: 1, 128>}, {transform_indices = @transform_5, window_bounds = array<i64: 16, 128>}]} {
    %c0 = arith.constant 0 : index
    %c0_0 = arith.constant 0 : index
    %0 = vector.load %arg1[%c0, %c0_0] : memref<16x128xbf16, #tpu.memory_space<vmem>>, vector<16x128xbf16>
    %1 = arith.extf %0 : vector<16x128xbf16> to vector<16x128xf32>
    %cst = arith.constant 0.000000e+00 : f32
    %2 = vector.broadcast %cst : f32 to vector<16x128xf32>
    %3 = arith.maximumf %1, %2 : vector<16x128xf32>
    %4 = arith.truncf %3 : vector<16x128xf32> to vector<16x128xbf16>
    %c0_1 = arith.constant 0 : index
    %c0_2 = arith.constant 0 : index
    %5 = vector.load %arg2[%c0_1, %c0_2] : memref<128x128xbf16, #tpu.memory_space<vmem>>, vector<128x128xbf16>
    %cst_3 = arith.constant dense<0.000000e+00> : vector<16x128xf32>
    %6 = tpu.matmul %4, %5, %cst_3 {dimension_numbers = #tpu.dot_dimension_numbers<[1], [0], [0], [1], [0, 0, 1, 1], [], []>} : vector<16x128xbf16>, vector<128x128xbf16>, vector<16x128xf32> -> vector<16x128xf32>
    %c0_4 = arith.constant 0 : index
    %c0_5 = arith.constant 0 : index
    %7 = vector.load %arg3[%c0_4, %c0_5] : memref<1x128xf32, #tpu.memory_space<vmem>>, vector<1x128xf32>
    %8 = vector.broadcast %7 : vector<1x128xf32> to vector<16x128xf32>
    %9 = arith.addf %6, %8 : vector<16x128xf32>
    %cst_6 = arith.constant 0.000000e+00 : f32
    %10 = vector.broadcast %cst_6 : f32 to vector<16x128xf32>
    %11 = arith.maximumf %9, %10 : vector<16x128xf32>
    %12 = arith.truncf %11 : vector<16x128xf32> to vector<16x128xbf16>
    %c0_7 = arith.constant 0 : index
    %c0_8 = arith.constant 0 : index
    %13 = vector.load %arg4[%c0_7, %c0_8] : memref<128x128xbf16, #tpu.memory_space<vmem>>, vector<128x128xbf16>
    %cst_9 = arith.constant dense<0.000000e+00> : vector<16x128xf32>
    %14 = tpu.matmul %12, %13, %cst_9 {dimension_numbers = #tpu.dot_dimension_numbers<[1], [0], [0], [1], [0, 0, 1, 1], [], []>} : vector<16x128xbf16>, vector<128x128xbf16>, vector<16x128xf32> -> vector<16x128xf32>
    %c0_10 = arith.constant 0 : index
    %c0_11 = arith.constant 0 : index
    %15 = vector.load %arg5[%c0_10, %c0_11] : memref<1x128xf32, #tpu.memory_space<vmem>>, vector<1x128xf32>
    %16 = vector.broadcast %15 : vector<1x128xf32> to vector<16x128xf32>
    %17 = arith.addf %14, %16 : vector<16x128xf32>
    %18 = arith.addf %17, %1 : vector<16x128xf32>
    %19 = arith.truncf %18 : vector<16x128xf32> to vector<16x128xbf16>
    %c0_12 = arith.constant 0 : index
    %c0_13 = arith.constant 0 : index
    %20 = vector.load %arg6[%c0_12, %c0_13] : memref<16x128xbf16, #tpu.memory_space<vmem>>, vector<16x128xbf16>
    tpu.vector_store %arg6[%c0_12, %c0_13], %19 {strides = array<i32>} : memref<16x128xbf16, #tpu.memory_space<vmem>>, vector<16x128xbf16>,
    return
  }
  func.func @transform_0(%arg0: i32) -> (i32, i32) {
    %c0_i32 = arith.constant 0 : i32
    %c0_i32_0 = arith.constant 0 : i32
    return %arg0, %c0_i32 : i32, i32
  }
  func.func @transform_1(%arg0: i32) -> (i32, i32) {
    %c0_i32 = arith.constant 0 : i32
    %c0_i32_0 = arith.constant 0 : i32
    %c0_i32_1 = arith.constant 0 : i32
    return %c0_i32, %c0_i32_0 : i32, i32
  }
  func.func @transform_2(%arg0: i32) -> (i32, i32) {
    %c0_i32 = arith.constant 0 : i32
    %c0_i32_0 = arith.constant 0 : i32
    %c0_i32_1 = arith.constant 0 : i32
    return %c0_i32, %c0_i32_0 : i32, i32
  }
  func.func @transform_3(%arg0: i32) -> (i32, i32) {
    %c0_i32 = arith.constant 0 : i32
    %c0_i32_0 = arith.constant 0 : i32
    %c0_i32_1 = arith.constant 0 : i32
    return %c0_i32, %c0_i32_0 : i32, i32
  }
  func.func @transform_4(%arg0: i32) -> (i32, i32) {
    %c0_i32 = arith.constant 0 : i32
    %c0_i32_0 = arith.constant 0 : i32
    %c0_i32_1 = arith.constant 0 : i32
    return %c0_i32, %c0_i32_0 : i32, i32
  }
  func.func @transform_5(%arg0: i32) -> (i32, i32) {
    %c0_i32 = arith.constant 0 : i32
    %c0_i32_0 = arith.constant 0 : i32
    return %arg0, %c0_i32 : i32, i32
  }
}

</mosaic_0001>

<bundles_post_ra>
// kernel: tpu_custom_call.1
= control target key start
LH: loop header
LB: loop body
LE: loop exit
PB: predicated region body
PF: predicated region fallthrough
CT: control target
= control target key end

     0   :  { %10 = vsyncpa [#allocation3], 0  ;;  %s1263_s0 = inlined_call_operand.hbm [shape: bf16[20,128], index: 0, kind: input, shape index: {}]   ;;  %s1264_s1 = inlined_call_operand.hbm [shape: bf16[128,128], index: 1, kind: input, shape index: {}]   ;;  %s1265_s2 = inlined_call_operand.vmem [shape: f32[1,128], index: 2, kind: input, shape index: {}]   ;;  %s1266_s3 = inlined_call_operand.hbm [shape: bf16[128,128], index: 3, kind: input, shape index: {}]   ;;  %s1267_s4 = inlined_call_operand.vmem [shape: f32[1,128], index: 4, kind: input, shape index: {}]   ;;  %s1268_s5 = inlined_call_operand.hbm [shape: bf16[20,128], index: 5, kind: output, shape index: {}]  }
   0x1   :  { %12 = vsyncpa [#allocation3 + $0x1], 0 }
   0x2   :  { %13 = vsyncpa [#allocation6], 0 }
   0x3   :  { %14 = vsyncpa [#allocation4], 0 }
   0x4   :  { %16 = vsyncpa [#allocation4 + $0x1], 0  ;;  %s1038_s18 = smov 0   ;;  %s1040_s19 = smov 0  }
   0x5   :  { %s1042_s20 = smov 0   ;;  %s1044_s21 = smov 0  }
   0x6 LB: > { %s1059_s22 = sadd.s32 4294967295, %s994_s21   ;;  %s647_s23 = sadd.s32 4294967294, %s994_s21   ;;  %s994_s21 = sphi %s1044_s21, %s1285_s21   ;;  %s990_s20 = sphi %s1042_s20, %s1284_s20   ;;  %s986_s19 = sphi %s1040_s19, %s1283_s19   ;;  %s982_s18 = sphi %s1038_s18, %s1282_s18  }
   0x7   : > { %s1063_s24 = sadd.s32 1, %s994_s21   ;;  %s29_s25 = sadd.s32 1, %s990_s20 }
   0x8   : > { %s26_s26 = ssub.s32 %s994_s21, %s1063_s24  ;;  %p36_p0 = scmp.ne.s32.totalorder %s990_s20, %s986_s19 }
   0x9   : > { %p27_p1 = scmp.eq.s32.totalorder %s26_s26, 0  ;;  %p37_p2 = scmp.eq.s32.totalorder %s994_s21, 0 }
   0xa   : > { %p42_p3 = scmp.ne.s32.totalorder %s986_s19, %s982_s18  ;;  %p1269_p4 = scmp.eq.s32.totalorder %s1059_s22, 0 }
   0xb   : > { %s1075_s27 = scalar_select %p27_p1, %s990_s20, %s29_s25  }
   0xc   : > { %p1077_p5 = por %p37_p2, %p36_p0  ;;  %p1083_p6 = por %p1269_p4, %p42_p3 }
   0xd   : > { %p150_p7 = scmp.eq.s32.totalorder %s1059_s22, 1  ;;  %p156_p8 = scmp.eq.s32.totalorder %s647_s23, 1 }
   0xe   : > { %s1272_s29 = scalar_select %p1083_p6, 1, 0 }
   0xf   : > { %p648_p9 = scmp.ge.s32.totalorder %s994_s21, 1  ;;  %p163_p10 = scmp.lt.s32.totalorder %s994_s21, 3 }
  0x10   : > { %p1090_p11 = por %p150_p7, %p36_p0  ;;  %p1094_p12 = por %p156_p8, %p42_p3 }
  0x11   : > { %p1098_p13 = pnand %p648_p9, %p163_p10  ;;  %s996_s8 = smov [#allocation5]  }
  0x12   : > { %s1273_s30 = scalar_select %p1090_p11, 1, 0 }
  0x13   : > { %s1274_s6 = scalar_select %p1094_p12, 1, 0 }
  0x14   : > { %p774_p1 = pneg %p1098_p13  ;;  %s175_s9 = sshll.u32 %s996_s8, 4  ;;  %s176_s9 = int_to_ptr.vmem [resolvable:$true] %s175_s9 }
  0x15   : > { %s997_s11 = smov [#allocation7]   ;;  %s859_s13 = scalar_lea.vmem %s176_s9, 1024 }
  0x16   : > { %p1106_p2 = pnand %p774_p1, %p1269_p4  ;;  %s191_s12 = sshll.u32 %s997_s11, 4  ;;  %s192_s12 = int_to_ptr.vmem [resolvable:$true] %s191_s12 }
  0x17   : > { %p860_p3 = scmp.ne.s32.totalorder %s176_s9, %s859_s13  ;;  %p867_p9 = scmp.lt.s32.totalorder %s176_s9, %s176_s9 }
  0x18   : > { %p850_p0 = pneg %p1106_p2  ;;  %p868_p10 = scmp.lt.s32.totalorder %s859_s13, %s859_s13 }
  0x1a   : > { %p862_p7 = pnand %p860_p3, %p850_p0  ;;  %p869_p12 = por %p868_p10, %p867_p9 }
  0x1c   : > { %p863_p8 = pneg %p862_p7 }
  0x1e   : > { %p870_p1 = pnand %p869_p12, %p863_p8 }
  0x20   : > { %873 = shalt.err (!%p870_p1)
}
  0x21   : > { %s998_s14 = smov 64   ;;  %s999_s15 = smov 4  }
  0x22   : > { %777 = dma.hbm_to_vmem [thread:$0]  (!%p1106_p2), %s1264_s1, 1024, %s176_s9, [#allocation6], %s998_s14, %s998_s14, %s999_s15  }
  0x23   : > { %s885_s23 = scalar_lea.vmem %s192_s12, 1024  ;;  %p893_p11 = scmp.lt.s32.totalorder %s192_s12, %s192_s12 }
  0x24   : > { %p886_p4 = scmp.ne.s32.totalorder %s192_s12, %s885_s23  ;;  %p894_p6 = scmp.lt.s32.totalorder %s885_s23, %s885_s23 }
  0x26   : > { %p888_p3 = pnand %p886_p4, %p850_p0  ;;  %p895_p9 = por %p894_p6, %p893_p11 }
  0x28   : > { %p889_p7 = pneg %p888_p3 }
  0x2a   : > { %p896_p12 = pnand %p895_p9, %p889_p7 }
  0x2c   : > { %899 = shalt.err (!%p896_p12)
}
  0x2d   : > { %780 = dma.hbm_to_vmem [thread:$0]  (!%p1106_p2), %s1266_s3, 1024, %s192_s12, [#allocation6], %s998_s14, %s998_s14, %s999_s15  }
  0x2e   : > { %p651_p8 = scmp.ge.s32.totalorder %s994_s21, 2 }
  0x30   : > { %204 = sbr.rel (%p651_p8) target bundleno = 85 (0x55), region = 32 }
  0x35   : > { %207 = sbr.rel (!%p1077_p5) target bundleno = 85 (0x55), region = 36  ;;  %s208_s8 = sand.u32 (%p1077_p5), 1, %s990_s20  }
  0x36   : > { %s653_s9 = sshll.u32 (%p1077_p5), %s994_s21, 1  ;;  %s652_s11 = sshll.u32 (%p1077_p5), %s208_s8, 3 }
  0x37   : > { %s214_s13 = ssub.s32 (%p1077_p5), 3, %s653_s9  ;;  %s1138_s14 = scalar_lea.sflag (%p1077_p5), [#allocation3], %s208_s8 }
  0x38   : > { %p215_p4 = scmp.lt.s32.totalorder (%p1077_p5), %s214_s13, 2  ;;  %s212_s15 = scalar_lea.vmem (%p1077_p5), [#allocation2], %s652_s11 }
  0x3a   : > { %s1287_s13 = smov (!%p215_p4, %s214_s13), 2 }
  0x3b   : > { %s1135_s10 = sshll.u32 %s1287_s13, 6 }
  0x3c   : > { %s219_s12 = ssub.s32 128, %s1135_s10 }
  0x3d   : > { %220 = vsyncadd %s1138_s14, %s219_s12  ;;  %p655_p5 = scmp.ne.s32.totalorder %s1135_s10, 0  ;;  %s693_s28 = sshll.u32 %s994_s21, 7 }
  0x3e   : > { %s1146_s23 = scalar_lea.hbm %s1263_s0, %s693_s28  ;;  %s225_s25 = sshll.u32 %s212_s15, 4  ;;  %s1148_s25 = int_to_ptr.vmem [resolvable:$true] %s225_s25 }
  0x3f   : > { %s900_s26 = scalar_lea.hbm %s1146_s23, %s1135_s10  ;;  %s904_s11 = scalar_lea.hbm %s1263_s0, 192 }
  0x40   : > { %p901_p6 = scmp.ne.s32.totalorder %s1146_s23, %s900_s26  ;;  %p905_p0 = scmp.lt.s32.totalorder %s1146_s23, %s1263_s0 }
  0x41   : > { %p906_p10 = scmp.lt.s32.totalorder %s904_s11, %s900_s26 }
  0x42   : > { %p902_p11 = pnand %p901_p6, %p655_p5 }
  0x43   : > { %p907_p1 = por %p906_p10, %p905_p0 }
  0x44   : > { %p903_p2 = pneg %p902_p11 }
  0x46   : > { %p908_p3 = pnand %p907_p1, %p903_p2 }
  0x48   : > { %911 = shalt.err (!%p908_p3)
}
  0x49   : > { %s912_s15 = scalar_lea.vmem %s1148_s25, %s1135_s10  ;;  %s1000_s28 = smov [#allocation2]  }
  0x4a   : > { %p913_p7 = scmp.ne.s32.totalorder %s1148_s25, %s912_s15  ;;  %s916_s16 = sshll.u32 %s1000_s28, 4  ;;  %s917_s16 = int_to_ptr.vmem [resolvable:$false] %s916_s16 }
  0x4b   : > { %s918_s17 = scalar_lea.vmem %s917_s16, 256  ;;  %p919_p4 = scmp.lt.s32.totalorder %s1148_s25, %s917_s16 }
  0x4c   : > { %p914_p9 = pnand %p913_p7, %p655_p5  ;;  %p920_p6 = scmp.lt.s32.totalorder %s918_s17, %s912_s15 }
  0x4e   : > { %p915_p12 = pneg %p914_p9  ;;  %p921_p11 = por %p920_p6, %p919_p4 }
  0x50   : > { %p922_p0 = pnand %p921_p11, %p915_p12 }
  0x52   : > { %925 = shalt.err (!%p922_p0)
}
  0x53   : > { %s1001_s26 = smov 64   ;;  %s1002_s8 = smov 4  }
  0x54   : > { %231 = dma.hbm_to_vmem [thread:$0]  (%p655_p5), %s1146_s23, %s1135_s10, %s1148_s25, %s1138_s14, %s1001_s26, %s1001_s26, %s1002_s8  }
  0x55 PF: > { %237 = sbr.rel (%p1098_p13) target bundleno = 562 (0x232), region = 40  ;;  %s1177_s9 = sand.u32 (!%p1098_p13), 1, %s986_s19  }
  0x56   : > { %s660_s11 = sshll.u32 (!%p1098_p13), %s1177_s9, 3  ;;  %s240_s13 = scalar_lea.sflag (!%p1098_p13), [#allocation3], %s1177_s9 }
  0x57   : > { %s1183_s12 = scalar_lea.vmem (!%p1098_p13), [#allocation2], %s660_s11  ;;  %p1277_p2 = scmp.ne.s32.totalorder (!%p1098_p13), %s1272_s29, 0 }
  0x5a   : > { %969 = dma.done.wait (%p1277_p2), %s240_s13, 128  }
  0x5b   : > { %971 = vsyncadd (%p1277_p2), %s240_s13, 4294967168  ;;  %p1278_p5 = scmp.eq.s32.totalorder %s1059_s22, 0 }
  0x5d   : > { %973 = dma.done.wait (%p1278_p5), [#allocation6], 2048   ;;  %p1279_p13 = pmov %p1278_p5 }
  0x5e   : > { %v1003_v0 = vmov 0.0   ;;  %vm1004_vm0 = vmmov 0   ;;  %v832_v1 = vld [vmem:[#allocation5 + $0x38] sm:$0xff]   ;;  %v833_v2 = vld [vmem:[#allocation5 + $0x30] sm:$0xff]   ;;  %v834_v3 = vld [vmem:[#allocation5 + $0x28] sm:$0xff]   ;;  %s277_s23 = scalar_lea.vmem [#allocation8], %s660_s11 }
  0x5f   : > { %975 = vsyncadd (%p1279_p13), [#allocation6], 4294965248  ;;  %724 = vmatprep.subr.bf16.mxu0 %v1003_v0  ;;  %740 = vmatprep.mubr.msk.bf16.mxu0 %vm1004_vm0, %v1003_v0  ;;  %v840_v4 = vld [vmem:[#allocation7 + $0x38] sm:$0xff]   ;;  %v835_v5 = vld [vmem:[#allocation5 + $0x20] sm:$0xff]   ;;  %s536_s25 = scalar_lea.sflag [#allocation4], %s1177_s9  ;;  %p1280_p10 = scmp.ne.s32.totalorder %s1273_s30, 0 }
  0x60   : > { %744 = vmatprep.subr.bf16.mxu1 %v1003_v0  ;;  %760 = vmatprep.mubr.msk.bf16.mxu1 %vm1004_vm0, %v1003_v0  ;;  %v841_v6 = vld [vmem:[#allocation7 + $0x30] sm:$0xff]   ;;  %v836_v7 = vld [vmem:[#allocation5 + $0x18] sm:$0xff]   ;;  %v842_v8 = vld [vmem:[#allocation7 + $0x28] sm:$0xff]   ;;  %s685_s15 = sshll.u32 (%p1280_p10), %s1059_s22, 1 }
  0x61   : > { %725 = vmatpush3.bf16.msra.mxu0 %v832_v1  ;;  %745 = vmatpush3.bf16.msra.mxu1 %v840_v4  ;;  %v837_v9 = vld [vmem:[#allocation5 + $0x10] sm:$0xff]   ;;  %v843_v11 = vld [vmem:[#allocation7 + $0x20] sm:$0xff]   ;;  %v838_v14 = vld [vmem:[#allocation5 + $0x8] sm:$0xff]   ;;  %s544_s28 = ssub.s32 (%p1280_p10), 3, %s685_s15 }
  0x62   : > { %726 = vmatprep.subr.bf16.mxu0 %v1003_v0  ;;  %746 = vmatprep.subr.bf16.mxu1 %v1003_v0  ;;  %v698_v10 = vld [vmem:[%s1183_s12] sm:$0xff]   ;;  %v839_v18 = vld [vmem:[#allocation5] sm:$0xff]   ;;  %v846_v21 = vld [vmem:[#allocation7 + $0x8] sm:$0xff]   ;;  %p545_p1 = scmp.lt.s32.totalorder (%p1280_p10), %s544_s28, 2 }
  0x63   : > { %v699_v12 = vunpack.c.l.bf16 %v698_v10  ;;  %v700_v13 = vunpack.c.h.bf16 %v698_v10  ;;  %v844_v15 = vld [vmem:[#allocation7 + $0x18] sm:$0xff]   ;;  %v845_v20 = vld [vmem:[#allocation7 + $0x10] sm:$0xff]   ;;  %v847_v22 = vld [vmem:[#allocation7] sm:$0xff]  }
  0x64   : > { %v664_v23 = vld [vmem:[%s1265_s2] ss:$0 sm:$0xff] }
  0x65   : > { %727 = vmatpush3.bf16.msra.mxu0 %v833_v2  ;;  %747 = vmatpush3.bf16.msra.mxu1 %v841_v6  ;;  %v293_v16 = vmax.f32 %v699_v12, 0.0  ;;  %v294_v17 = vmax.f32 %v700_v13, 0.0  ;;  %v673_v33 = vld [vmem:[%s1267_s4] ss:$0 sm:$0xff] }
  0x66   : > { %728 = vmatprep.subr.bf16.mxu0 %v1003_v0  ;;  %748 = vmatprep.subr.bf16.mxu1 %v1003_v0 }
  0x67   : > { %v295_v19 = vpack.c.bf16 %v294_v17, %v293_v16 }
  0x69   : > { %729 = vmatpush3.bf16.msra.mxu0 %v834_v3  ;;  %749 = vmatpush3.bf16.msra.mxu1 %v842_v8 }
  0x6a   : > { %730 = vmatprep.subr.bf16.mxu0 %v1003_v0  ;;  %750 = vmatprep.subr.bf16.mxu1 %v1003_v0 }
  0x6d   : > { %731 = vmatpush3.bf16.msra.mxu0 %v835_v5  ;;  %751 = vmatpush3.bf16.msra.mxu1 %v843_v11 }
  0x6e   : > { %732 = vmatprep.subr.bf16.mxu0 %v1003_v0  ;;  %752 = vmatprep.subr.bf16.mxu1 %v1003_v0 }
  0x71   : > { %733 = vmatpush3.bf16.msra.mxu0 %v836_v7  ;;  %753 = vmatpush3.bf16.msra.mxu1 %v844_v15 }
  0x72   : > { %734 = vmatprep.subr.bf16.mxu0 %v1003_v0  ;;  %754 = vmatprep.subr.bf16.mxu1 %v1003_v0 }
  0x75   : > { %735 = vmatpush3.bf16.msra.mxu0 %v837_v9  ;;  %755 = vmatpush3.bf16.msra.mxu1 %v845_v20 }
  0x76   : > { %736 = vmatprep.subr.bf16.mxu0 %v1003_v0  ;;  %756 = vmatprep.subr.bf16.mxu1 %v1003_v0 }
  0x79   : > { %737 = vmatpush3.bf16.msra.mxu0 %v838_v14  ;;  %757 = vmatpush3.bf16.msra.mxu1 %v846_v21 }
  0x7a   : > { %738 = vmatprep.subr.bf16.mxu0 %v1003_v0  ;;  %758 = vmatprep.subr.bf16.mxu1 %v1003_v0 }
  0x7d   : > { %739 = vmatpush3.bf16.msra.mxu0 %v839_v18  ;;  %759 = vmatpush3.bf16.msra.mxu1 %v847_v22 }
  0x80   : > { %741 = vmatmul.mubr.bf16.vlgmr.msra.gmra.mxu0 %v295_v19 }
 0x140   : > { %v401_v24 = vpop.f32.mrf.mxu0 }
 0x141   : > { %v402_v26 = vadd.f32 %v664_v23, %v401_v24 }
 0x142   : > { %v742_v25 = vpop.f32.mrf.mxu0 }
 0x143   : > { %v408_v30 = vmax.f32 %v402_v26, 0.0 }
 0x144   : > { %v404_v27 = vpop.f32.mrf.mxu0 }
 0x145   : > { %v405_v28 = vadd.f32 %v664_v23, %v404_v27 }
 0x146   : > { %v743_v29 = vpop.f32.mrf.mxu0 }
 0x147   : > { %v409_v31 = vmax.f32 %v405_v28, 0.0 }
 0x149   : > { %v410_v32 = vpack.c.bf16 %v409_v31, %v408_v30 }
 0x14b   : > { %761 = vmatmul.mubr.bf16.vlgmr.msra.gmra.mxu1 %v410_v32 }
 0x20b   : > { %v516_v34 = vpop.f32.mrf.mxu1 }
 0x20c   : > { %v517_v36 = vadd.f32 %v673_v33, %v516_v34 }
 0x20d   : > { %v762_v35 = vpop.f32.mrf.mxu1 }
 0x20e   : > { %v523_v40 = vadd.f32 %v699_v12, %v517_v36 }
 0x20f   : > { %v519_v37 = vpop.f32.mrf.mxu1 }
 0x210   : > { %v520_v38 = vadd.f32 %v673_v33, %v519_v37 }
 0x211   : > { %v763_v39 = vpop.f32.mrf.mxu1 }
 0x212   : > { %v524_v41 = vadd.f32 %v700_v13, %v520_v38  ;;  %542 = sbr.rel (!%p1280_p10) target bundleno = 562 (0x232), region = 56 }
 0x214   : > { %v704_v42 = vpack.c.bf16 %v524_v41, %v523_v40 }
 0x216   : > { %705 = vst [vmem:[%s277_s23] sm:$0xff] %v704_v42  }
 0x217   : > { %s1289_s28 = smov (!%p545_p1, %s544_s28), 2 }
 0x218   : > { %s1206_s16 = sshll.u32 %s1289_s28, 6 }
 0x219   : > { %s549_s17 = ssub.s32 128, %s1206_s16 }
 0x21a   : > { %550 = vsyncadd %s536_s25, %s549_s17  ;;  %p687_p3 = scmp.ne.s32.totalorder %s1206_s16, 0  ;;  %s696_s26 = sshll.u32 %s1059_s22, 7 }
 0x21b   : > { %s1216_s11 = scalar_lea.hbm %s1268_s5, %s696_s26  ;;  %s555_s13 = sshll.u32 %s277_s23, 4  ;;  %s1218_s13 = int_to_ptr.vmem [resolvable:$true] %s555_s13 }
 0x21c   : > { %s926_s12 = scalar_lea.vmem %s1218_s13, %s1206_s16  ;;  %s1005_s29 = smov [#allocation8]  }
 0x21d   : > { %p927_p7 = scmp.ne.s32.totalorder %s1218_s13, %s926_s12  ;;  %s930_s7 = sshll.u32 %s1005_s29, 4  ;;  %s931_s7 = int_to_ptr.vmem [resolvable:$false] %s930_s7 }
 0x21e   : > { %s932_s22 = scalar_lea.vmem %s931_s7, 256  ;;  %p933_p4 = scmp.lt.s32.totalorder %s1218_s13, %s931_s7 }
 0x21f   : > { %p928_p9 = pnand %p927_p7, %p687_p3  ;;  %p934_p6 = scmp.lt.s32.totalorder %s932_s22, %s926_s12 }
 0x221   : > { %p929_p12 = pneg %p928_p9  ;;  %p935_p11 = por %p934_p6, %p933_p4 }
 0x223   : > { %p936_p0 = pnand %p935_p11, %p929_p12 }
 0x225   : > { %939 = shalt.err (!%p936_p0)
}
 0x226   : > { %s940_s10 = scalar_lea.hbm %s1216_s11, %s1206_s16  ;;  %s944_s15 = scalar_lea.hbm %s1268_s5, 192 }
 0x227   : > { %p941_p2 = scmp.ne.s32.totalorder %s1216_s11, %s940_s10  ;;  %p945_p10 = scmp.lt.s32.totalorder %s1216_s11, %s1268_s5 }
 0x228   : > { %p946_p1 = scmp.lt.s32.totalorder %s944_s15, %s940_s10 }
 0x229   : > { %p942_p5 = pnand %p941_p2, %p687_p3 }
 0x22a   : > { %p947_p7 = por %p946_p1, %p945_p10 }
 0x22b   : > { %p943_p13 = pneg %p942_p5 }
 0x22d   : > { %p948_p9 = pnand %p947_p7, %p943_p13 }
 0x22f   : > { %951 = shalt.err (!%p948_p9)
}
 0x230   : > { %s1006_s26 = smov 64   ;;  %s1007_s30 = smov 4  }
 0x231   : > { %561 = dma.vmem_to_hbm [thread:$0]  (%p687_p3), %s1218_s13, %s1206_s16, %s1216_s11, %s536_s25, %s1006_s26, %s1006_s26, %s1007_s30  }
 0x232 PF: > { %s570_s8 = sand.u32 1, %s982_s18   ;;  %p1281_p12 = scmp.ne.s32.totalorder %s1274_s6, 0 }
 0x233   : > { %s571_s12 = scalar_lea.sflag [#allocation4], %s570_s8 }
 0x234   : > { %p782_p4 = pnand %p651_p8, %p1281_p12 }
 0x236   : > { %p783_p6 = pneg %p782_p4 }
 0x238   : > { %977 = dma.done.wait (%p783_p6), %s571_s12, 128  }
 0x239   : > { %979 = vsyncadd (%p783_p6), %s571_s12, 4294967168  ;;  %p19_p11 = scmp.ge.s32.totalorder %s1063_s24, 4   ;;  %s1282_s18 = smov %s986_s19 }
 0x23a   : > { %s1283_s19 = smov %s990_s20  ;;  %s1284_s20 = smov %s1075_s27 }
 0x23b   : > { %s1285_s21 = smov %s1063_s24  ;;  %21 = sbr.rel (!%p19_p11) target bundleno = 6 (0x6), region = 93 }
 0x240   :  { %576 = vsyncpa [#allocation3], 1 }
 0x241   :  { %578 = vsyncpa [#allocation3 + $0x1], 1 }
 0x242   :  { %579 = vsyncpa [#allocation6], 1 }
 0x243   :  { %580 = vsyncpa [#allocation4], 1 }
 0x244   :  { %582 = vsyncpa [#allocation4 + $0x1], 1 }

// kernel: tpu_custom_call.1
= control target key start
LH: loop header
LB: loop body
LE: loop exit
PB: predicated region body
PF: predicated region fallthrough
CT: control target
= control target key end

     0   :  { %10 = vsyncpa [#allocation3], 0  ;;  %s1263_s0 = inlined_call_operand.hbm [shape: bf16[20,128], index: 0, kind: input, shape index: {}]   ;;  %s1264_s1 = inlined_call_operand.hbm [shape: bf16[128,128], index: 1, kind: input, shape index: {}]   ;;  %s1265_s2 = inlined_call_operand.vmem [shape: f32[1,128], index: 2, kind: input, shape index: {}]   ;;  %s1266_s3 = inlined_call_operand.hbm [shape: bf16[128,128], index: 3, kind: input, shape index: {}]   ;;  %s1267_s4 = inlined_call_operand.vmem [shape: f32[1,128], index: 4, kind: input, shape index: {}]   ;;  %s1268_s5 = inlined_call_operand.hbm [shape: bf16[20,128], index: 5, kind: output, shape index: {}]  }
   0x1   :  { %12 = vsyncpa [#allocation3 + $0x1], 0 }
   0x2   :  { %13 = vsyncpa [#allocation6], 0 }
   0x3   :  { %14 = vsyncpa [#allocation4], 0 }
   0x4   :  { %16 = vsyncpa [#allocation4 + $0x1], 0  ;;  %s1038_s18 = smov 0   ;;  %s1040_s19 = smov 0  }
   0x5   :  { %s1042_s20 = smov 0   ;;  %s1044_s21 = smov 0  }
   0x6 LB: > { %s1059_s22 = sadd.s32 4294967295, %s994_s21   ;;  %s647_s23 = sadd.s32 4294967294, %s994_s21   ;;  %s994_s21 = sphi %s1044_s21, %s1285_s21   ;;  %s990_s20 = sphi %s1042_s20, %s1284_s20   ;;  %s986_s19 = sphi %s1040_s19, %s1283_s19   ;;  %s982_s18 = sphi %s1038_s18, %s1282_s18  }
   0x7   : > { %s1063_s24 = sadd.s32 1, %s994_s21   ;;  %s29_s25 = sadd.s32 1, %s990_s20 }
   0x8   : > { %s26_s26 = ssub.s32 %s994_s21, %s1063_s24  ;;  %p36_p0 = scmp.ne.s32.totalorder %s990_s20, %s986_s19 }
   0x9   : > { %p27_p1 = scmp.eq.s32.totalorder %s26_s26, 0  ;;  %p37_p2 = scmp.eq.s32.totalorder %s994_s21, 0 }
   0xa   : > { %p42_p3 = scmp.ne.s32.totalorder %s986_s19, %s982_s18  ;;  %p1269_p4 = scmp.eq.s32.totalorder %s1059_s22, 0 }
   0xb   : > { %s1075_s27 = scalar_select %p27_p1, %s990_s20, %s29_s25  }
   0xc   : > { %p1077_p5 = por %p37_p2, %p36_p0  ;;  %p1083_p6 = por %p1269_p4, %p42_p3 }
   0xd   : > { %p150_p7 = scmp.eq.s32.totalorder %s1059_s22, 1  ;;  %p156_p8 = scmp.eq.s32.totalorder %s647_s23, 1 }
   0xe   : > { %s1272_s29 = scalar_select %p1083_p6, 1, 0 }
   0xf   : > { %p648_p9 = scmp.ge.s32.totalorder %s994_s21, 1  ;;  %p163_p10 = scmp.lt.s32.totalorder %s994_s21, 3 }
  0x10   : > { %p1090_p11 = por %p150_p7, %p36_p0  ;;  %p1094_p12 = por %p156_p8, %p42_p3 }
  0x11   : > { %p1098_p13 = pnand %p648_p9, %p163_p10  ;;  %s996_s8 = smov [#allocation5]  }
  0x12   : > { %s1273_s30 = scalar_select %p1090_p11, 1, 0 }
  0x13   : > { %s1274_s6 = scalar_select %p1094_p12, 1, 0 }
  0x14   : > { %p774_p1 = pneg %p1098_p13  ;;  %s175_s9 = sshll.u32 %s996_s8, 4  ;;  %s176_s9 = int_to_ptr.vmem [resolvable:$true] %s175_s9 }
  0x15   : > { %s997_s11 = smov [#allocation7]   ;;  %s859_s13 = scalar_lea.vmem %s176_s9, 1024 }
  0x16   : > { %p1106_p2 = pnand %p774_p1, %p1269_p4  ;;  %s191_s12 = sshll.u32 %s997_s11, 4  ;;  %s192_s12 = int_to_ptr.vmem [resolvable:$true] %s191_s12 }
  0x17   : > { %p860_p3 = scmp.ne.s32.totalorder %s176_s9, %s859_s13  ;;  %p867_p9 = scmp.lt.s32.totalorder %s176_s9, %s176_s9 }
  0x18   : > { %p850_p0 = pneg %p1106_p2  ;;  %p868_p10 = scmp.lt.s32.totalorder %s859_s13, %s859_s13 }
  0x1a   : > { %p862_p7 = pnand %p860_p3, %p850_p0  ;;  %p869_p12 = por %p868_p10, %p867_p9 }
  0x1c   : > { %p863_p8 = pneg %p862_p7 }
  0x1e   : > { %p870_p1 = pnand %p869_p12, %p863_p8 }
  0x20   : > { %873 = shalt.err (!%p870_p1)
}
  0x21   : > { %s998_s14 = smov 64   ;;  %s999_s15 = smov 4  }
  0x22   : > { %777 = dma.hbm_to_vmem [thread:$0]  (!%p1106_p2), %s1264_s1, 1024, %s176_s9, [#allocation6], %s998_s14, %s998_s14, %s999_s15  }
  0x23   : > { %s885_s23 = scalar_lea.vmem %s192_s12, 1024  ;;  %p893_p11 = scmp.lt.s32.totalorder %s192_s12, %s192_s12 }
  0x24   : > { %p886_p4 = scmp.ne.s32.totalorder %s192_s12, %s885_s23  ;;  %p894_p6 = scmp.lt.s32.totalorder %s885_s23, %s885_s23 }
  0x26   : > { %p888_p3 = pnand %p886_p4, %p850_p0  ;;  %p895_p9 = por %p894_p6, %p893_p11 }
  0x28   : > { %p889_p7 = pneg %p888_p3 }
  0x2a   : > { %p896_p12 = pnand %p895_p9, %p889_p7 }
  0x2c   : > { %899 = shalt.err (!%p896_p12)
}
  0x2d   : > { %780 = dma.hbm_to_vmem [thread:$0]  (!%p1106_p2), %s1266_s3, 1024, %s192_s12, [#allocation6], %s998_s14, %s998_s14, %s999_s15  }
  0x2e   : > { %p651_p8 = scmp.ge.s32.totalorder %s994_s21, 2 }
  0x30   : > { %204 = sbr.rel (%p651_p8) target bundleno = 85 (0x55), region = 32 }
  0x35   : > { %207 = sbr.rel (!%p1077_p5) target bundleno = 85 (0x55), region = 36  ;;  %s208_s8 = sand.u32 (%p1077_p5), 1, %s990_s20  }
  0x36   : > { %s653_s9 = sshll.u32 (%p1077_p5), %s994_s21, 1  ;;  %s652_s11 = sshll.u32 (%p1077_p5), %s208_s8, 3 }
  0x37   : > { %s214_s13 = ssub.s32 (%p1077_p5), 3, %s653_s9  ;;  %s1138_s14 = scalar_lea.sflag (%p1077_p5), [#allocation3], %s208_s8 }
  0x38   : > { %p215_p4 = scmp.lt.s32.totalorder (%p1077_p5), %s214_s13, 2  ;;  %s212_s15 = scalar_lea.vmem (%p1077_p5), [#allocation2], %s652_s11 }
  0x3a   : > { %s1287_s13 = smov (!%p215_p4, %s214_s13), 2 }
  0x3b   : > { %s1135_s10 = sshll.u32 %s1287_s13, 6 }
  0x3c   : > { %s219_s12 = ssub.s32 128, %s1135_s10 }
  0x3d   : > { %220 = vsyncadd %s1138_s14, %s219_s12  ;;  %p655_p5 = scmp.ne.s32.totalorder %s1135_s10, 0  ;;  %s693_s28 = sshll.u32 %s994_s21, 7 }
  0x3e   : > { %s1146_s23 = scalar_lea.hbm %s1263_s0, %s693_s28  ;;  %s225_s25 = sshll.u32 %s212_s15, 4  ;;  %s1148_s25 = int_to_ptr.vmem [resolvable:$true] %s225_s25 }
  0x3f   : > { %s900_s26 = scalar_lea.hbm %s1146_s23, %s1135_s10  ;;  %s904_s11 = scalar_lea.hbm %s1263_s0, 192 }
  0x40   : > { %p901_p6 = scmp.ne.s32.totalorder %s1146_s23, %s900_s26  ;;  %p905_p0 = scmp.lt.s32.totalorder %s1146_s23, %s1263_s0 }
  0x41   : > { %p906_p10 = scmp.lt.s32.totalorder %s904_s11, %s900_s26 }
  0x42   : > { %p902_p11 = pnand %p901_p6, %p655_p5 }
  0x43   : > { %p907_p1 = por %p906_p10, %p905_p0 }
  0x44   : > { %p903_p2 = pneg %p902_p11 }
  0x46   : > { %p908_p3 = pnand %p907_p1, %p903_p2 }
  0x48   : > { %911 = shalt.err (!%p908_p3)
}
  0x49   : > { %s912_s15 = scalar_lea.vmem %s1148_s25, %s1135_s10  ;;  %s1000_s28 = smov [#allocation2]  }
  0x4a   : > { %p913_p7 = scmp.ne.s32.totalorder %s1148_s25, %s912_s15  ;;  %s916_s16 = sshll.u32 %s1000_s28, 4  ;;  %s917_s16 = int_to_ptr.vmem [resolvable:$false] %s916_s16 }
  0x4b   : > { %s918_s17 = scalar_lea.vmem %s917_s16, 256  ;;  %p919_p4 = scmp.lt.s32.totalorder %s1148_s25, %s917_s16 }
  0x4c   : > { %p914_p9 = pnand %p913_p7, %p655_p5  ;;  %p920_p6 = scmp.lt.s32.totalorder %s918_s17, %s912_s15 }
  0x4e   : > { %p915_p12 = pneg %p914_p9  ;;  %p921_p11 = por %p920_p6, %p919_p4 }
  0x50   : > { %p922_p0 = pnand %p921_p11, %p915_p12 }
  0x52   : > { %925 = shalt.err (!%p922_p0)
}
  0x53   : > { %s1001_s26 = smov 64   ;;  %s1002_s8 = smov 4  }
  0x54   : > { %231 = dma.hbm_to_vmem [thread:$0]  (%p655_p5), %s1146_s23, %s1135_s10, %s1148_s25, %s1138_s14, %s1001_s26, %s1001_s26, %s1002_s8  }
  0x55 PF: > { %237 = sbr.rel (%p1098_p13) target bundleno = 562 (0x232), region = 40  ;;  %s1177_s9 = sand.u32 (!%p1098_p13), 1, %s986_s19  }
  0x56   : > { %s660_s11 = sshll.u32 (!%p1098_p13), %s1177_s9, 3  ;;  %s240_s13 = scalar_lea.sflag (!%p1098_p13), [#allocation3], %s1177_s9 }
  0x57   : > { %s1183_s12 = scalar_lea.vmem (!%p1098_p13), [#allocation2], %s660_s11  ;;  %p1277_p2 = scmp.ne.s32.totalorder (!%p1098_p13), %s1272_s29, 0 }
  0x5a   : > { %969 = dma.done.wait (%p1277_p2), %s240_s13, 128  }
  0x5b   : > { %971 = vsyncadd (%p1277_p2), %s240_s13, 4294967168  ;;  %p1278_p5 = scmp.eq.s32.totalorder %s1059_s22, 0 }
  0x5d   : > { %973 = dma.done.wait (%p1278_p5), [#allocation6], 2048   ;;  %p1279_p13 = pmov %p1278_p5 }
  0x5e   : > { %v1003_v0 = vmov 0.0   ;;  %vm1004_vm0 = vmmov 0   ;;  %v832_v1 = vld [vmem:[#allocation5 + $0x38] sm:$0xff]   ;;  %v833_v2 = vld [vmem:[#allocation5 + $0x30] sm:$0xff]   ;;  %v834_v3 = vld [vmem:[#allocation5 + $0x28] sm:$0xff]   ;;  %s277_s23 = scalar_lea.vmem [#allocation8], %s660_s11 }
  0x5f   : > { %975 = vsyncadd (%p1279_p13), [#allocation6], 4294965248  ;;  %724 = vmatprep.subr.bf16.mxu0 %v1003_v0  ;;  %740 = vmatprep.mubr.msk.bf16.mxu0 %vm1004_vm0, %v1003_v0  ;;  %v840_v4 = vld [vmem:[#allocation7 + $0x38] sm:$0xff]   ;;  %v835_v5 = vld [vmem:[#allocation5 + $0x20] sm:$0xff]   ;;  %s536_s25 = scalar_lea.sflag [#allocation4], %s1177_s9  ;;  %p1280_p10 = scmp.ne.s32.totalorder %s1273_s30, 0 }
  0x60   : > { %744 = vmatprep.subr.bf16.mxu1 %v1003_v0  ;;  %760 = vmatprep.mubr.msk.bf16.mxu1 %vm1004_vm0, %v1003_v0  ;;  %v841_v6 = vld [vmem:[#allocation7 + $0x30] sm:$0xff]   ;;  %v836_v7 = vld [vmem:[#allocation5 + $0x18] sm:$0xff]   ;;  %v842_v8 = vld [vmem:[#allocation7 + $0x28] sm:$0xff]   ;;  %s685_s15 = sshll.u32 (%p1280_p10), %s1059_s22, 1 }
  0x61   : > { %725 = vmatpush3.bf16.msra.mxu0 %v832_v1  ;;  %745 = vmatpush3.bf16.msra.mxu1 %v840_v4  ;;  %v837_v9 = vld [vmem:[#allocation5 + $0x10] sm:$0xff]   ;;  %v843_v11 = vld [vmem:[#allocation7 + $0x20] sm:$0xff]   ;;  %v838_v14 = vld [vmem:[#allocation5 + $0x8] sm:$0xff]   ;;  %s544_s28 = ssub.s32 (%p1280_p10), 3, %s685_s15 }
  0x62   : > { %726 = vmatprep.subr.bf16.mxu0 %v1003_v0  ;;  %746 = vmatprep.subr.bf16.mxu1 %v1003_v0  ;;  %v698_v10 = vld [vmem:[%s1183_s12] sm:$0xff]   ;;  %v839_v18 = vld [vmem:[#allocation5] sm:$0xff]   ;;  %v846_v21 = vld [vmem:[#allocation7 + $0x8] sm:$0xff]   ;;  %p545_p1 = scmp.lt.s32.totalorder (%p1280_p10), %s544_s28, 2 }
  0x63   : > { %v699_v12 = vunpack.c.l.bf16 %v698_v10  ;;  %v700_v13 = vunpack.c.h.bf16 %v698_v10  ;;  %v844_v15 = vld [vmem:[#allocation7 + $0x18] sm:$0xff]   ;;  %v845_v20 = vld [vmem:[#allocation7 + $0x10] sm:$0xff]   ;;  %v847_v22 = vld [vmem:[#allocation7] sm:$0xff]  }
  0x64   : > { %v664_v23 = vld [vmem:[%s1265_s2] ss:$0 sm:$0xff] }
  0x65   : > { %727 = vmatpush3.bf16.msra.mxu0 %v833_v2  ;;  %747 = vmatpush3.bf16.msra.mxu1 %v841_v6  ;;  %v293_v16 = vmax.f32 %v699_v12, 0.0  ;;  %v294_v17 = vmax.f32 %v700_v13, 0.0  ;;  %v673_v33 = vld [vmem:[%s1267_s4] ss:$0 sm:$0xff] }
  0x66   : > { %728 = vmatprep.subr.bf16.mxu0 %v1003_v0  ;;  %748 = vmatprep.subr.bf16.mxu1 %v1003_v0 }
  0x67   : > { %v295_v19 = vpack.c.bf16 %v294_v17, %v293_v16 }
  0x69   : > { %729 = vmatpush3.bf16.msra.mxu0 %v834_v3  ;;  %749 = vmatpush3.bf16.msra.mxu1 %v842_v8 }
  0x6a   : > { %730 = vmatprep.subr.bf16.mxu0 %v1003_v0  ;;  %750 = vmatprep.subr.bf16.mxu1 %v1003_v0 }
  0x6d   : > { %731 = vmatpush3.bf16.msra.mxu0 %v835_v5  ;;  %751 = vmatpush3.bf16.msra.mxu1 %v843_v11 }
  0x6e   : > { %732 = vmatprep.subr.bf16.mxu0 %v1003_v0  ;;  %752 = vmatprep.subr.bf16.mxu1 %v1003_v0 }
  0x71   : > { %733 = vmatpush3.bf16.msra.mxu0 %v836_v7  ;;  %753 = vmatpush3.bf16.msra.mxu1 %v844_v15 }
  0x72   : > { %734 = vmatprep.subr.bf16.mxu0 %v1003_v0  ;;  %754 = vmatprep.subr.bf16.mxu1 %v1003_v0 }
  0x75   : > { %735 = vmatpush3.bf16.msra.mxu0 %v837_v9  ;;  %755 = vmatpush3.bf16.msra.mxu1 %v845_v20 }
  0x76   : > { %736 = vmatprep.subr.bf16.mxu0 %v1003_v0  ;;  %756 = vmatprep.subr.bf16.mxu1 %v1003_v0 }
  0x79   : > { %737 = vmatpush3.bf16.msra.mxu0 %v838_v14  ;;  %757 = vmatpush3.bf16.msra.mxu1 %v846_v21 }
  0x7a   : > { %738 = vmatprep.subr.bf16.mxu0 %v1003_v0  ;;  %758 = vmatprep.subr.bf16.mxu1 %v1003_v0 }
  0x7d   : > { %739 = vmatpush3.bf16.msra.mxu0 %v839_v18  ;;  %759 = vmatpush3.bf16.msra.mxu1 %v847_v22 }
  0x80   : > { %741 = vmatmul.mubr.bf16.vlgmr.msra.gmra.mxu0 %v295_v19 }
 0x140   : > { %v401_v24 = vpop.f32.mrf.mxu0 }
 0x141   : > { %v402_v26 = vadd.f32 %v664_v23, %v401_v24 }
 0x142   : > { %v742_v25 = vpop.f32.mrf.mxu0 }
 0x143   : > { %v408_v30 = vmax.f32 %v402_v26, 0.0 }
 0x144   : > { %v404_v27 = vpop.f32.mrf.mxu0 }
 0x145   : > { %v405_v28 = vadd.f32 %v664_v23, %v404_v27 }
 0x146   : > { %v743_v29 = vpop.f32.mrf.mxu0 }
 0x147   : > { %v409_v31 = vmax.f32 %v405_v28, 0.0 }
 0x149   : > { %v410_v32 = vpack.c.bf16 %v409_v31, %v408_v30 }
 0x14b   : > { %761 = vmatmul.mubr.bf16.vlgmr.msra.gmra.mxu1 %v410_v32 }
 0x20b   : > { %v516_v34 = vpop.f32.mrf.mxu1 }
 0x20c   : > { %v517_v36 = vadd.f32 %v673_v33, %v516_v34 }
 0x20d   : > { %v762_v35 = vpop.f32.mrf.mxu1 }
 0x20e   : > { %v523_v40 = vadd.f32 %v699_v12, %v517_v36 }
 0x20f   : > { %v519_v37 = vpop.f32.mrf.mxu1 }
 0x210   : > { %v520_v38 = vadd.f32 %v673_v33, %v519_v37 }
 0x211   : > { %v763_v39 = vpop.f32.mrf.mxu1 }
 0x212   : > { %v524_v41 = vadd.f32 %v700_v13, %v520_v38  ;;  %542 = sbr.rel (!%p1280_p10) target bundleno = 562 (0x232), region = 56 }
 0x214   : > { %v704_v42 = vpack.c.bf16 %v524_v41, %v523_v40 }
 0x216   : > { %705 = vst [vmem:[%s277_s23] sm:$0xff] %v704_v42  }
 0x217   : > { %s1289_s28 = smov (!%p545_p1, %s544_s28), 2 }
 0x218   : > { %s1206_s16 = sshll.u32 %s1289_s28, 6 }
 0x219   : > { %s549_s17 = ssub.s32 128, %s1206_s16 }
 0x21a   : > { %550 = vsyncadd %s536_s25, %s549_s17  ;;  %p687_p3 = scmp.ne.s32.totalorder %s1206_s16, 0  ;;  %s696_s26 = sshll.u32 %s1059_s22, 7 }
 0x21b   : > { %s1216_s11 = scalar_lea.hbm %s1268_s5, %s696_s26  ;;  %s555_s13 = sshll.u32 %s277_s23, 4  ;;  %s1218_s13 = int_to_ptr.vmem [resolvable:$true] %s555_s13 }
 0x21c   : > { %s926_s12 = scalar_lea.vmem %s1218_s13, %s1206_s16  ;;  %s1005_s29 = smov [#allocation8]  }
 0x21d   : > { %p927_p7 = scmp.ne.s32.totalorder %s1218_s13, %s926_s12  ;;  %s930_s7 = sshll.u32 %s1005_s29, 4  ;;  %s931_s7 = int_to_ptr.vmem [resolvable:$false] %s930_s7 }
 0x21e   : > { %s932_s22 = scalar_lea.vmem %s931_s7, 256  ;;  %p933_p4 = scmp.lt.s32.totalorder %s1218_s13, %s931_s7 }
 0x21f   : > { %p928_p9 = pnand %p927_p7, %p687_p3  ;;  %p934_p6 = scmp.lt.s32.totalorder %s932_s22, %s926_s12 }
 0x221   : > { %p929_p12 = pneg %p928_p9  ;;  %p935_p11 = por %p934_p6, %p933_p4 }
 0x223   : > { %p936_p0 = pnand %p935_p11, %p929_p12 }
 0x225   : > { %939 = shalt.err (!%p936_p0)
}
 0x226   : > { %s940_s10 = scalar_lea.hbm %s1216_s11, %s1206_s16  ;;  %s944_s15 = scalar_lea.hbm %s1268_s5, 192 }
 0x227   : > { %p941_p2 = scmp.ne.s32.totalorder %s1216_s11, %s940_s10  ;;  %p945_p10 = scmp.lt.s32.totalorder %s1216_s11, %s1268_s5 }
 0x228   : > { %p946_p1 = scmp.lt.s32.totalorder %s944_s15, %s940_s10 }
 0x229   : > { %p942_p5 = pnand %p941_p2, %p687_p3 }
 0x22a   : > { %p947_p7 = por %p946_p1, %p945_p10 }
 0x22b   : > { %p943_p13 = pneg %p942_p5 }
 0x22d   : > { %p948_p9 = pnand %p947_p7, %p943_p13 }
 0x22f   : > { %951 = shalt.err (!%p948_p9)
}
 0x230   : > { %s1006_s26 = smov 64   ;;  %s1007_s30 = smov 4  }
 0x231   : > { %561 = dma.vmem_to_hbm [thread:$0]  (%p687_p3), %s1218_s13, %s1206_s16, %s1216_s11, %s536_s25, %s1006_s26, %s1006_s26, %s1007_s30  }
 0x232 PF: > { %s570_s8 = sand.u32 1, %s982_s18   ;;  %p1281_p12 = scmp.ne.s32.totalorder %s1274_s6, 0 }
 0x233   : > { %s571_s12 = scalar_lea.sflag [#allocation4], %s570_s8 }
 0x234   : > { %p782_p4 = pnand %p651_p8, %p1281_p12 }
 0x236   : > { %p783_p6 = pneg %p782_p4 }
 0x238   : > { %977 = dma.done.wait (%p783_p6), %s571_s12, 128  }
 0x239   : > { %979 = vsyncadd (%p783_p6), %s571_s12, 4294967168  ;;  %p19_p11 = scmp.ge.s32.totalorder %s1063_s24, 4   ;;  %s1282_s18 = smov %s986_s19 }
 0x23a   : > { %s1283_s19 = smov %s990_s20  ;;  %s1284_s20 = smov %s1075_s27 }
 0x23b   : > { %s1285_s21 = smov %s1063_s24  ;;  %21 = sbr.rel (!%p19_p11) target bundleno = 6 (0x6), region = 93 }
 0x240   :  { %576 = vsyncpa [#allocation3], 1 }
 0x241   :  { %578 = vsyncpa [#allocation3 + $0x1], 1 }
 0x242   :  { %579 = vsyncpa [#allocation6], 1 }
 0x243   :  { %580 = vsyncpa [#allocation4], 1 }
 0x244   :  { %582 = vsyncpa [#allocation4 + $0x1], 1 }

</bundles_post_ra>
